<compile_context>
chip_gen: v7x
topology: tpu7x:2x2x1
jax: 0.10.0
libtpu: 0.0.40
codegen_flags: <defaults>
</compile_context>

<pallas_src>
import functools

import jax
import jax.numpy as jnp
from jax.experimental import pallas as pl
from jax.experimental.pallas import tpu as pltpu


# Rows of the per-gene coefficient table (padded to 16 = 2 sublane groups).
_NC = 16
(_BETA, _GAMMA, _TON, _TOFF, _C_UB, _C_SG, _C_SBG_ON, _C_TAU_ON,   # group 0: induction
 _U0, _S0, _C_SBG_OFF, _C_TAU_OFF) = range(12)                      # group 1: repression


def _gene_coefficients(alpha, beta, gamma, ton, toff, scaling):
    """Hoisted per-gene work: log-space params in -> (16, G) f32 coefficient table.

    exp(scaling) is folded into the two coefficients that feed Uhat (c_ub, u0_)."""
    eps = jnp.float32(1e-6)
    a, b, g = jnp.exp(alpha), jnp.exp(beta), jnp.exp(gamma)
    to, tf, sc = jnp.exp(ton), jnp.exp(toff), jnp.exp(scaling)

    unstab = (jnp.abs(b - g) < eps).astype(jnp.float32)
    stab = 1.0 - unstab
    denom = g - b + eps

    c_ub = a / b
    c_sg = a / g
    c_sbg_on = a / denom * stab
    c_tau_on = a * unstab

    # Repression-phase initial condition = induction state at t = toff (u0 = s0 = 0).
    tau0 = jnp.maximum(tf - to, 0.0)
    expb0 = jnp.exp(-b * tau0)
    expg0 = jnp.exp(-g * tau0)
    u0_ = c_ub * (1.0 - expb0)
    s0_ = c_sg * (1.0 - expg0) + c_sbg_on * (expg0 - expb0) + c_tau_on * tau0 * expg0

    num_off = 0.0 - b * u0_          # (alpha - beta*u0) with alpha = 0 in repression
    c_sbg_off = num_off / denom * stab
    c_tau_off = num_off * unstab

    zeros = jnp.zeros_like(a)
    rows = [b, g, to, tf, c_ub * sc, c_sg, c_sbg_on, c_tau_on,
            u0_ * sc, s0_, c_sbg_off, c_tau_off, zeros, zeros, zeros, zeros]
    return jnp.stack(rows, axis=0).astype(jnp.float32)


def _decoder_kernel(t_ref, coef_ref, uhat_ref, shat_ref, *, neg_slope):
    # t block: (tn, 1); coef block: (16, tg); output blocks: (tn, tg).
    c = coef_ref[...]
    row = lambda k: c[k:k + 1, :]                      # (1, tg)

    beta, gamma = row(_BETA), row(_GAMMA)
    ton, toff = row(_TON), row(_TOFF)
    c_ub, c_sg = row(_C_UB), row(_C_SG)                # c_ub already * exp(scaling)
    c_sbg_on, c_tau_on = row(_C_SBG_ON), row(_C_TAU_ON)
    u0_, s0_ = row(_U0), row(_S0)                      # u0_ already * exp(scaling)
    c_sbg_off, c_tau_off = row(_C_SBG_OFF), row(_C_TAU_OFF)

    zero = jnp.float32(0.0)
    one = jnp.float32(1.0)

    # Hoist the single lane-broadcast of t (JAX does not CSE broadcast_in_dim).
    tb = jnp.broadcast_to(t_ref[...], uhat_ref.shape)  # (tn, tg)

    x_on = tb - ton
    x_off = tb - toff
    if neg_slope == 0.0:
        tau_on = jnp.maximum(x_on, zero)
        tau_off = jnp.maximum(x_off, zero)
    else:
        ns = jnp.float32(neg_slope)
        tau_on = jnp.where(x_on >= zero, x_on, ns * x_on)
        tau_off = jnp.where(x_off >= zero, x_off, ns * x_off)

    expb_on = jnp.exp(-(beta * tau_on))
    expg_on = jnp.exp(-(gamma * tau_on))
    expb_off = jnp.exp(-(beta * tau_off))
    expg_off = jnp.exp(-(gamma * tau_off))

    # Induction phase (u0 = s0 = 0, rate alpha).
    uhat_on = c_ub * (one - expb_on)
    shat_on = (c_sg * (one - expg_on)
               + c_sbg_on * (expg_on - expb_on)
               + c_tau_on * (tau_on * expg_on))

    # Repression phase (start from (u0_, s0_), rate 0).
    uhat_off = u0_ * expb_off
    shat_off = (s0_ * expg_off
                + c_sbg_off * (expg_off - expb_off)
                + c_tau_off * (tau_off * expg_off))

    induction = tb <= toff
    uhat = jnp.where(induction, uhat_on, uhat_off)
    shat = jnp.where(induction, shat_on, shat_off)

    uhat_ref[...] = jnp.maximum(uhat, zero)
    shat_ref[...] = jnp.maximum(shat, zero)


def _round_up(x, m):
    return ((x + m - 1) // m) * m


def decoder_forward(t, alpha, beta, gamma, ton, toff, scaling,
                    neg_slope=0.0, tn=None, tg=None):
    """Pallas decoder forward.

    t:        (N, 1) or (N,) float32 cell times
    alpha..scaling: (G,) float32 log-space parameters
    returns:  (Uhat, Shat), each (N, G) float32
    """
    t = jnp.asarray(t, jnp.float32).reshape(-1, 1)
    alpha = jnp.asarray(alpha, jnp.float32)
    N = t.shape[0]
    G = alpha.shape[0]

    # Large, lane-dense tiles: 2 outputs x 2 buffers x (512, 1024) f32 = 8 MiB of VMEM,
    # inside every generation's scoped default.
    if tg is None:
        tg = min(1024, _round_up(G, 128))
    if tn is None:
        tn = min(512, _round_up(N, 8))
        # v7x has 2 TensorCores: guarantee >= 2 grid steps along a parallel axis
        # whenever the problem is large enough to split.
        if _round_up(G, tg) // tg < 2 and _round_up(N, tn) // tn < 2 and N > 8:
            tn = _round_up(-(-N // 2), 8)
    N_pad = _round_up(N, tn)
    G_pad = _round_up(G, tg)

    coefs = _gene_coefficients(
        alpha,
        *(jnp.asarray(p, jnp.float32) for p in (beta, gamma, ton, toff, scaling)))
    if G_pad != G:
        coefs = jnp.pad(coefs, ((0, 0), (0, G_pad - G)))
    if N_pad != N:
        t = jnp.pad(t, ((0, N_pad - N), (0, 0)))

    kernel = functools.partial(_decoder_kernel, neg_slope=float(neg_slope))

    # Gene-block axis outermost, cell-block axis innermost: the (16, tg) coefficient
    # tile stays VMEM-resident across the inner loop; only the tiny t tile is re-fetched.
    t_spec = pl.BlockSpec((tn, 1), lambda j, i: (i, 0))
    c_spec = pl.BlockSpec((_NC, tg), lambda j, i: (0, j))
    o_spec = pl.BlockSpec((tn, tg), lambda j, i: (i, j))

    # Only raise the scoped-VMEM limit if a user-supplied tile actually needs it
    # (v5e default is 16 MiB; the default tiles use ~8 MiB).
    vmem_bytes = 2 * 2 * tn * tg * 4 + 2 * _NC * tg * 4 + 2 * tn * 4
    vmem_limit = None
    if vmem_bytes > 12 * 1024 * 1024:
        vmem_limit = min(int(vmem_bytes * 1.25) + (1 << 20), 64 * 1024 * 1024)

    uhat, shat = pl.pallas_call(
        kernel,
        out_shape=(jax.ShapeDtypeStruct((N_pad, G_pad), jnp.float32),
                   jax.ShapeDtypeStruct((N_pad, G_pad), jnp.float32)),
        grid_spec=pltpu.PrefetchScalarGridSpec(
            num_scalar_prefetch=0,
            grid=(G_pad // tg, N_pad // tn),
            in_specs=[t_spec, c_spec],
            out_specs=[o_spec, o_spec],
        ),
        compiler_params=pltpu.CompilerParams(
            dimension_semantics=("parallel", "parallel"),
            vmem_limit_bytes=vmem_limit),
    )(t, coefs)

    if N_pad != N or G_pad != G:
        uhat = uhat[:N, :G]
        shat = shat[:N, :G]
    return uhat, shat


def decoder_forward_ref(t, alpha, beta, gamma, ton, toff, scaling, neg_slope=0.0):
    """Plain-JAX reference mirroring the PyTorch forward / velovae ode()."""
    a, b, g = jnp.exp(alpha), jnp.exp(beta), jnp.exp(gamma)
    to, tf, sc = jnp.exp(ton), jnp.exp(toff), jnp.exp(scaling)
    eps = 1e-6
    unstab = (jnp.abs(b - g) < eps).astype(jnp.float32)

    def leaky(x):
        return jnp.where(x >= 0, x, neg_slope * x)

    def pred_su(tau, u0, s0, aa):
        expb, expg = jnp.exp(-b * tau), jnp.exp(-g * tau)
        uh = u0 * expb + aa / b * (1.0 - expb)
        sh = (s0 * expg + aa / g * (1.0 - expg)
              + (aa - b * u0) / (g - b + eps) * (expg - expb) * (1.0 - unstab)
              + (aa - b * u0) * tau * expg * unstab)
        return uh, sh

    t = jnp.asarray(t, jnp.float32).reshape(-1, 1)
    o = (t <= tf).astype(jnp.float32)
    uh_on, sh_on = pred_su(leaky(t - to), 0.0, 0.0, a)
    u0_, s0_ = pred_su(jnp.maximum(tf - to, 0.0), 0.0, 0.0, a)
    uh_off, sh_off = pred_su(leaky(t - tf), u0_, s0_, 0.0)
    uhat = uh_on * o + uh_off * (1.0 - o)
    shat = sh_on * o + sh_off * (1.0 - o)
    return jnp.maximum(uhat * sc, 0.0), jnp.maximum(shat, 0.0)


def _make_inputs(N, G, key):
    k = jax.random.split(key, 8)
    alpha = 0.3 * jax.random.normal(k[0], (G,), jnp.float32)
    beta = 0.3 * jax.random.normal(k[1], (G,), jnp.float32)
    # Keep |log(gamma) - log(beta)| >= 0.1: the velovae formula divides by
    # (gamma - beta + 1e-6), and near-degenerate rates make the (expg - expb)
    # cancellation dominate any f32 comparison (in the reference too).  Real fitted
    # splicing/degradation rates are well separated.
    sign = jnp.where(jax.random.bernoulli(k[2], 0.5, (G,)), 1.0, -1.0).astype(jnp.float32)
    gap = jax.random.uniform(k[3], (G,), jnp.float32, 0.1, 0.5)
    gamma = beta + sign * gap
    ton = jnp.log(jax.random.uniform(k[4], (G,), jnp.float32, 0.1, 2.0))
    toff = jnp.log(jax.random.uniform(k[5], (G,), jnp.float32, 2.5, 8.0))
    scaling = 0.2 * jax.random.normal(k[6], (G,), jnp.float32)
    t = jax.random.uniform(k[7], (N, 1), jnp.float32, 0.0, 10.0)
    return t, alpha, beta, gamma, ton, toff, scaling


def _check(a, b, name):
    assert a.shape == b.shape, (name, a.shape, b.shape)
    assert bool(jnp.all(jnp.isfinite(a))), name
    assert jnp.allclose(a, b, rtol=5e-4, atol=1e-4), (
        name, float(jnp.max(jnp.abs(a - b))))


if __name__ == "__main__":
    # Test 1: aligned small shapes, neg_slope = 0 (module default).
    N, G = 16, 256
    inputs = _make_inputs(N, G, jax.random.PRNGKey(0))
    uhat, shat = decoder_forward(*inputs, neg_slope=0.0)
    jax.block_until_ready((uhat, shat))
    uhat_r, shat_r = decoder_forward_ref(*inputs, neg_slope=0.0)
    assert uhat.shape == (N, G) and shat.shape == (N, G)
    _check(uhat, uhat_r, "Uhat")
    _check(shat, shat_r, "Shat")

    # Test 2: non-aligned shapes (exercises padding) + leaky-relu path.
    N2, G2 = 37, 300
    inputs2 = _make_inputs(N2, G2, jax.random.PRNGKey(1))
    uhat2, shat2 = decoder_forward(*inputs2, neg_slope=0.01)
    jax.block_until_ready((uhat2, shat2))
    uhat2_r, shat2_r = decoder_forward_ref(*inputs2, neg_slope=0.01)
    assert uhat2.shape == (N2, G2) and shat2.shape == (N2, G2)
    _check(uhat2, uhat2_r, "Uhat2")
    _check(shat2, shat2_r, "Shat2")

    print("KERNEL_OK")
</pallas_src>

<mosaic_0001>
module attributes {stable_mosaic.version = 11 : i64} {
  func.func @_decoder_kernel(%arg0: i32, %arg1: i32, %arg2: memref<8x1xf32, #tpu.memory_space<vmem>>, %arg3: memref<16x256xf32, #tpu.memory_space<vmem>>, %arg4: memref<8x256xf32, #tpu.memory_space<vmem>>, %arg5: memref<8x256xf32, #tpu.memory_space<vmem>>) attributes {dimension_semantics = [#tpu.dimension_semantics<parallel>, #tpu.dimension_semantics<parallel>], iteration_bounds = array<i64: 1, 2>, scalar_prefetch = 0 : i64, scratch_operands = 0 : i64, tpu.core_type = #tpu.core_type<tc>, window_params = [{transform_indices = @transform_0, window_bounds = array<i64: 8, 1>}, {transform_indices = @transform_1, window_bounds = array<i64: 16, 256>}, {transform_indices = @transform_2, window_bounds = array<i64: 8, 256>}, {transform_indices = @transform_3, window_bounds = array<i64: 8, 256>}]} {
    %c0 = arith.constant 0 : index
    %c0_0 = arith.constant 0 : index
    %0 = vector.load %arg3[%c0, %c0_0] : memref<16x256xf32, #tpu.memory_space<vmem>>, vector<16x256xf32>
    %1 = vector.extract_strided_slice %0 {offsets = [0, 0], sizes = [1, 256], strides = [1, 1]} : vector<16x256xf32> to vector<1x256xf32>
    %2 = vector.extract_strided_slice %0 {offsets = [1, 0], sizes = [1, 256], strides = [1, 1]} : vector<16x256xf32> to vector<1x256xf32>
    %3 = vector.extract_strided_slice %0 {offsets = [2, 0], sizes = [1, 256], strides = [1, 1]} : vector<16x256xf32> to vector<1x256xf32>
    %4 = vector.extract_strided_slice %0 {offsets = [3, 0], sizes = [1, 256], strides = [1, 1]} : vector<16x256xf32> to vector<1x256xf32>
    %5 = vector.extract_strided_slice %0 {offsets = [4, 0], sizes = [1, 256], strides = [1, 1]} : vector<16x256xf32> to vector<1x256xf32>
    %6 = vector.extract_strided_slice %0 {offsets = [5, 0], sizes = [1, 256], strides = [1, 1]} : vector<16x256xf32> to vector<1x256xf32>
    %7 = vector.extract_strided_slice %0 {offsets = [6, 0], sizes = [1, 256], strides = [1, 1]} : vector<16x256xf32> to vector<1x256xf32>
    %8 = vector.extract_strided_slice %0 {offsets = [7, 0], sizes = [1, 256], strides = [1, 1]} : vector<16x256xf32> to vector<1x256xf32>
    %9 = vector.extract_strided_slice %0 {offsets = [8, 0], sizes = [1, 256], strides = [1, 1]} : vector<16x256xf32> to vector<1x256xf32>
    %10 = vector.extract_strided_slice %0 {offsets = [9, 0], sizes = [1, 256], strides = [1, 1]} : vector<16x256xf32> to vector<1x256xf32>
    %11 = vector.extract_strided_slice %0 {offsets = [10, 0], sizes = [1, 256], strides = [1, 1]} : vector<16x256xf32> to vector<1x256xf32>
    %12 = vector.extract_strided_slice %0 {offsets = [11, 0], sizes = [1, 256], strides = [1, 1]} : vector<16x256xf32> to vector<1x256xf32>
    %c0_1 = arith.constant 0 : index
    %c0_2 = arith.constant 0 : index
    %13 = vector.load %arg2[%c0_1, %c0_2] : memref<8x1xf32, #tpu.memory_space<vmem>>, vector<8x1xf32>
    %14 = vector.shape_cast %13 : vector<8x1xf32> to vector<8x1xf32>
    %15 = vector.broadcast %14 : vector<8x1xf32> to vector<8x256xf32>
    %16 = vector.broadcast %3 : vector<1x256xf32> to vector<8x256xf32>
    %17 = arith.subf %15, %16 : vector<8x256xf32>
    %18 = vector.broadcast %4 : vector<1x256xf32> to vector<8x256xf32>
    %19 = arith.subf %15, %18 : vector<8x256xf32>
    %cst = arith.constant 0.000000e+00 : f32
    %20 = vector.broadcast %cst : f32 to vector<8x256xf32>
    %21 = arith.maximumf %17, %20 : vector<8x256xf32>
    %cst_3 = arith.constant 0.000000e+00 : f32
    %22 = vector.broadcast %cst_3 : f32 to vector<8x256xf32>
    %23 = arith.maximumf %19, %22 : vector<8x256xf32>
    %24 = vector.broadcast %1 : vector<1x256xf32> to vector<8x256xf32>
    %25 = arith.mulf %24, %21 : vector<8x256xf32>
    %cst_4 = arith.constant 0.000000e+00 : f32
    %26 = vector.broadcast %cst_4 : f32 to vector<8x256xf32>
    %27 = arith.subf %26, %25 : vector<8x256xf32>
    %28 = math.exp %27 : vector<8x256xf32>
    %29 = vector.broadcast %2 : vector<1x256xf32> to vector<8x256xf32>
    %30 = arith.mulf %29, %21 : vector<8x256xf32>
    %cst_5 = arith.constant 0.000000e+00 : f32
    %31 = vector.broadcast %cst_5 : f32 to vector<8x256xf32>
    %32 = arith.subf %31, %30 : vector<8x256xf32>
    %33 = math.exp %32 : vector<8x256xf32>
    %34 = vector.broadcast %1 : vector<1x256xf32> to vector<8x256xf32>
    %35 = arith.mulf %34, %23 : vector<8x256xf32>
    %cst_6 = arith.constant 0.000000e+00 : f32
    %36 = vector.broadcast %cst_6 : f32 to vector<8x256xf32>
    %37 = arith.subf %36, %35 : vector<8x256xf32>
    %38 = math.exp %37 : vector<8x256xf32>
    %39 = vector.broadcast %2 : vector<1x256xf32> to vector<8x256xf32>
    %40 = arith.mulf %39, %23 : vector<8x256xf32>
    %cst_7 = arith.constant 0.000000e+00 : f32
    %41 = vector.broadcast %cst_7 : f32 to vector<8x256xf32>
    %42 = arith.subf %41, %40 : vector<8x256xf32>
    %43 = math.exp %42 : vector<8x256xf32>
    %cst_8 = arith.constant 1.000000e+00 : f32
    %44 = vector.broadcast %cst_8 : f32 to vector<8x256xf32>
    %45 = arith.subf %44, %28 : vector<8x256xf32>
    %46 = vector.broadcast %5 : vector<1x256xf32> to vector<8x256xf32>
    %47 = arith.mulf %46, %45 : vector<8x256xf32>
    %cst_9 = arith.constant 1.000000e+00 : f32
    %48 = vector.broadcast %cst_9 : f32 to vector<8x256xf32>
    %49 = arith.subf %48, %33 : vector<8x256xf32>
    %50 = vector.broadcast %6 : vector<1x256xf32> to vector<8x256xf32>
    %51 = arith.mulf %50, %49 : vector<8x256xf32>
    %52 = arith.subf %33, %28 : vector<8x256xf32>
    %53 = vector.broadcast %7 : vector<1x256xf32> to vector<8x256xf32>
    %54 = arith.mulf %53, %52 : vector<8x256xf32>
    %55 = arith.addf %51, %54 : vector<8x256xf32>
    %56 = arith.mulf %21, %33 : vector<8x256xf32>
    %57 = vector.broadcast %8 : vector<1x256xf32> to vector<8x256xf32>
    %58 = arith.mulf %57, %56 : vector<8x256xf32>
    %59 = arith.addf %55, %58 : vector<8x256xf32>
    %60 = vector.broadcast %9 : vector<1x256xf32> to vector<8x256xf32>
    %61 = arith.mulf %60, %38 : vector<8x256xf32>
    %62 = vector.broadcast %10 : vector<1x256xf32> to vector<8x256xf32>
    %63 = arith.mulf %62, %43 : vector<8x256xf32>
    %64 = arith.subf %43, %38 : vector<8x256xf32>
    %65 = vector.broadcast %11 : vector<1x256xf32> to vector<8x256xf32>
    %66 = arith.mulf %65, %64 : vector<8x256xf32>
    %67 = arith.addf %63, %66 : vector<8x256xf32>
    %68 = arith.mulf %23, %43 : vector<8x256xf32>
    %69 = vector.broadcast %12 : vector<1x256xf32> to vector<8x256xf32>
    %70 = arith.mulf %69, %68 : vector<8x256xf32>
    %71 = arith.addf %67, %70 : vector<8x256xf32>
    %72 = vector.broadcast %4 : vector<1x256xf32> to vector<8x256xf32>
    %73 = arith.cmpf ole, %15, %72 : vector<8x256xf32>
    %74 = arith.select %73, %47, %61 : vector<8x256xi1>, vector<8x256xf32>
    %75 = arith.select %73, %59, %71 : vector<8x256xi1>, vector<8x256xf32>
    %cst_10 = arith.constant 0.000000e+00 : f32
    %76 = vector.broadcast %cst_10 : f32 to vector<8x256xf32>
    %77 = arith.maximumf %74, %76 : vector<8x256xf32>
    %c0_11 = arith.constant 0 : index
    %c0_12 = arith.constant 0 : index
    %78 = vector.load %arg4[%c0_11, %c0_12] : memref<8x256xf32, #tpu.memory_space<vmem>>, vector<8x256xf32>
    tpu.vector_store %arg4[%c0_11, %c0_12], %77 {strides = array<i32>} : memref<8x256xf32, #tpu.memory_space<vmem>>, vector<8x256xf32>,
    %cst_13 = arith.constant 0.000000e+00 : f32
    %79 = vector.broadcast %cst_13 : f32 to vector<8x256xf32>
    %80 = arith.maximumf %75, %79 : vector<8x256xf32>
    %c0_14 = arith.constant 0 : index
    %c0_15 = arith.constant 0 : index
    %81 = vector.load %arg5[%c0_14, %c0_15] : memref<8x256xf32, #tpu.memory_space<vmem>>, vector<8x256xf32>
    tpu.vector_store %arg5[%c0_14, %c0_15], %80 {strides = array<i32>} : memref<8x256xf32, #tpu.memory_space<vmem>>, vector<8x256xf32>,
    return
  }
  func.func @transform_0(%arg0: i32, %arg1: i32) -> (i32, i32) {
    %c0_i32 = arith.constant 0 : i32
    %c0_i32_0 = arith.constant 0 : i32
    return %arg1, %c0_i32 : i32, i32
  }
  func.func @transform_1(%arg0: i32, %arg1: i32) -> (i32, i32) {
    %c0_i32 = arith.constant 0 : i32
    %c0_i32_0 = arith.constant 0 : i32
    return %c0_i32, %arg0 : i32, i32
  }
  func.func @transform_2(%arg0: i32, %arg1: i32) -> (i32, i32) {
    %c0_i32 = arith.constant 0 : i32
    return %arg1, %arg0 : i32, i32
  }
  func.func @transform_3(%arg0: i32, %arg1: i32) -> (i32, i32) {
    %c0_i32 = arith.constant 0 : i32
    return %arg1, %arg0 : i32, i32
  }
}

</mosaic_0001>

<bundles_post_ra>
// kernel: tpu_custom_call.1
= control target key start
LH: loop header
LB: loop body
LE: loop exit
PB: predicated region body
PF: predicated region fallthrough
CT: control target
= control target key end

     0   :  { %9 = vsyncpa [#allocation3], 0  ;;  %s1165_s0 = inlined_call_operand.vmem [shape: f32[16,1], index: 0, kind: input, shape index: {}]   ;;  %s1166_s1 = inlined_call_operand.hbm [shape: f32[16,256], index: 1, kind: input, shape index: {}]   ;;  %s1167_s2 = inlined_call_operand.hbm [shape: f32[16,256], index: 2, kind: output, shape index: {0}]   ;;  %s1168_s3 = inlined_call_operand.hbm [shape: f32[16,256], index: 3, kind: output, shape index: {1}]  }
   0x1   :  { %10 = vsyncpa [#allocation4], 0 }
   0x2   :  { %12 = vsyncpa [#allocation4 + $0x1], 0 }
   0x3   :  { %13 = vsyncpa [#allocation7], 0 }
   0x4   :  { %15 = vsyncpa [#allocation7 + $0x1], 0  ;;  %s853_s12 = smov 0   ;;  %s855_s13 = smov 0  }
   0x5   :  { %s857_s14 = smov 0   ;;  %s859_s15 = smov 0  }
   0x6   :  { %s861_s16 = smov 0   ;;  %s863_s17 = smov 0  }
   0x7 LB: > { %s572_s18 = sadd.s32 4294967295, %s825_s17   ;;  %s573_s19 = sadd.s32 4294967294, %s825_s17   ;;  %s825_s17 = sphi %s863_s17, %s21_s17   ;;  %s821_s16 = sphi %s861_s16, %s1186_s16   ;;  %s817_s15 = sphi %s859_s15, %s1185_s15   ;;  %s813_s14 = sphi %s857_s14, %s1184_s14   ;;  %s809_s13 = sphi %s855_s13, %s1183_s13   ;;  %s805_s12 = sphi %s853_s12, %s1182_s12  }
   0x8   : > { %s30_s20 = sadd.s32 1, %s821_s16  ;;  %s94_s21 = sadd.s32 1, %s813_s14 }
   0x9   : > { %p31_p0 = scmp.ge.s32.totalorder %s30_s20, 2  ;;  %p104_p1 = scmp.ne.s32.totalorder %s813_s14, %s809_s13 }
   0xa   : > { %p105_p2 = scmp.eq.s32.totalorder %s572_s18, 1  ;;  %p110_p3 = scmp.ne.s32.totalorder %s809_s13, %s805_s12 }
   0xb   : > { %s1188_s20 = smov (%p31_p0, %s30_s20), 0  ;;  %p111_p5 = scmp.eq.s32.totalorder %s573_s19, 1 }
   0xc   : > { %p893_p4 = por %p105_p2, %p104_p1  ;;  %s89_s23 = ssub.s32 %s821_s16, %s1188_s20 }
   0xd   : > { %p574_p6 = scmp.ge.s32.totalorder %s825_s17, 1  ;;  %p92_p7 = scmp.eq.s32.totalorder %s89_s23, 0 }
   0xe   : > { %s1173_s22 = scalar_select %p893_p4, 1, 0 }
   0xf   : > { %p900_p8 = por %p111_p5, %p110_p3  ;;  %p146_p9 = scmp.lt.s32.totalorder %s825_s17, 3 }
  0x10   : > { %s906_s25 = scalar_select %p92_p7, %s813_s14, %s94_s21  }
  0x11   : > { %s1174_s24 = scalar_select %p900_p8, 1, 0 }
  0x12   : > { %p908_p10 = pnand %p574_p6, %p146_p9  ;;  %p912_p11 = scmp.eq.s32.totalorder %s572_s18, 0 }
  0x13   : > { %s827_s28 = smov [#allocation2]   ;;  %s683_s6 = scalar_lea.hbm %s1166_s1, 512 }
  0x14   : > { %s1175_s26 = scalar_select %p908_p10, 1, 0 }
  0x15   : > { %s1176_s27 = scalar_select %p912_p11, 1, 0 }
  0x16   : > { %p600_p12 = pneg %p908_p10  ;;  %s161_s29 = sshll.u32 %s827_s28, 4  ;;  %s162_s29 = int_to_ptr.vmem [resolvable:$true] %s161_s29 }
  0x17   : > { %p684_p0 = scmp.ne.s32.totalorder %s1166_s1, %s683_s6  ;;  %p690_p5 = scmp.lt.u32.totalorder %s683_s6, %s1166_s1 }
  0x18   : > { %p920_p13 = pnand %p912_p11, %p600_p12 }
  0x1a   : > { %p685_p1 = pneg %p920_p13 }
  0x1c   : > { %p686_p2 = pnand %p685_p1, %p684_p0 }
  0x1e   : > { %p687_p3 = pneg %p686_p2 }
  0x20   : > { %p692_p6 = pnand %p690_p5, %p687_p3 }
  0x22   : > { %695 = shalt.err (!%p692_p6)
}
  0x23   : > { %s696_s11 = scalar_lea.vmem %s162_s29, 512  ;;  %p704_p8 = scmp.lt.s32.totalorder %s162_s29, %s162_s29 }
  0x24   : > { %p697_p7 = scmp.ne.s32.totalorder %s162_s29, %s696_s11  ;;  %p705_p4 = scmp.lt.s32.totalorder %s696_s11, %s696_s11 }
  0x26   : > { %p699_p9 = pnand %p697_p7, %p685_p1  ;;  %p706_p11 = por %p705_p4, %p704_p8 }
  0x28   : > { %p700_p12 = pneg %p699_p9 }
  0x2a   : > { %p707_p10 = pnand %p706_p11, %p700_p12 }
  0x2c   : > { %710 = shalt.err (!%p707_p10)
}
  0x2d   : > { %s828_s18 = smov 256   ;;  %s829_s19 = smov 16  }
  0x2e   : > { %603 = dma.hbm_to_vmem [thread:$0]  (!%p920_p13), %s1166_s1, 512, %s162_s29, [#allocation3], %s828_s18, %s828_s18, %s829_s19  }
  0x2f   : > { %p1178_p0 = scmp.ne.s32.totalorder %s1175_s26, 0 }
  0x30   : > { %p1179_p2 = scmp.ne.s32.totalorder (!%p1178_p0), %s1176_s27, 0 }
  0x31   : > { %184 = sbr.rel (%p1178_p0) target bundleno = 263 (0x107), region = 28 }
  0x38   : > { %792 = dma.done.wait (%p1179_p2), [#allocation3], 512  }
  0x39   : > { %794 = vsyncadd (%p1179_p2), [#allocation3], 4294966784  ;;  %p212_p4 = scmp.lt.s32.totalorder %s817_s15, 1  ;;  %v830_v0 = vmov 0   ;;  %v229_v2 = vlaneseq  ;;  %v959_v6 = vld [vmem:[#allocation2] sm:$0xff]  ;;  %v961_v7 = vld [vmem:[#allocation2 + $0x8] sm:$0xff] }
  0x3a   : > { %666 = vset.pattern.permute.xlu0 %v830_v0  ;;  %v1017_v55 = vld [vmem:[#allocation2 + $0x10] sm:$0xff]  ;;  %v1019_v56 = vld [vmem:[#allocation2 + $0x18] sm:$0xff]  ;;  %s1038_s26 = sand.u32 1, %s809_s13   ;;  %s590_s6 = sshll.u32 %s817_s15, 8 }
  0x3b   : > { %s213_s28 = scalar_select %p212_p4, %s817_s15, 1  ;;  %v951_v3 = vshrl.u32 %v229_v2, 7 }
  0x3c   : > { %s579_s27 = sshll.u32 %s1038_s26, 4  ;;  %s1071_s11 = scalar_lea.hbm %s1167_s2, %s590_s6 }
  0x3d   : > { %s581_s30 = sshll.u32 %s213_s28, 3  ;;  %v954_v4 = vsub.s32 2, %v951_v3  ;;  %v957_v5 = vsub.s32 3, %v951_v3  ;;  %v964_v8 = vsub.s32 0, %v951_v3  ;;  %v967_v9 = vsub.s32 1, %v951_v3  ;;  %s204_s7 = scalar_lea.vmem [#allocation5], %s579_s27 }
  0x3e   : > { %s215_s29 = scalar_lea.vmem %s1165_s0, %s581_s30  ;;  %v305_v51 = vsub.s32 4, %v951_v3  ;;  %v317_v52 = vsub.s32 5, %v951_v3  ;;  %v329_v53 = vsub.s32 6, %v951_v3  ;;  %v343_v54 = vsub.s32 7, %v951_v3  ;;  %s437_s8 = sshll.u32 %s204_s7, 4  ;;  %s1073_s8 = int_to_ptr.vmem [resolvable:$true] %s437_s8 }
  0x3f   : > { %v223_v1 = vld [vmem:[%s215_s29] sm:$0xff]  ;;  %v232_v10 = vrot.slane %v959_v6, %v954_v4  ;;  %v236_v11 = vrot.slane %v961_v7, %v954_v4  ;;  %v975_v12 = vrot.slane %v959_v6, %v957_v5  ;;  %v979_v13 = vrot.slane %v961_v7, %v957_v5  ;;  %s1077_s18 = scalar_lea.vmem [#allocation6], %s579_s27  ;;  %s416_s21 = scalar_lea.sflag [#allocation4], %s1038_s26 }
  0x40   : > { %226 = vperm.xlu0 %666, %v223_v1   ;;  %v256_v15 = vrot.slane %v959_v6, %v964_v8  ;;  %v260_v16 = vrot.slane %v961_v7, %v964_v8  ;;  %v272_v17 = vrot.slane %v959_v6, %v967_v9  ;;  %v276_v18 = vrot.slane %v961_v7, %v967_v9  ;;  %s453_s19 = sshll.u32 %s1077_s18, 4  ;;  %s711_s23 = scalar_lea.vmem %s1073_s8, 256  ;;  %s1117_s19 = int_to_ptr.vmem [resolvable:$true] %s453_s19 }
  0x41   : > { %v306_v57 = vrot.slane %v959_v6, %v305_v51  ;;  %v310_v58 = vrot.slane %v961_v7, %v305_v51  ;;  %v318_v59 = vrot.slane %v959_v6, %v317_v52  ;;  %v322_v60 = vrot.slane %v961_v7, %v317_v52  ;;  %p712_p8 = scmp.ne.s32.totalorder %s1073_s8, %s711_s23  ;;  %p1180_p10 = scmp.ne.s32.totalorder %s1173_s22, 0 }
  0x42   : > { %v330_v61 = vrot.slane %v959_v6, %v329_v53  ;;  %v334_v63 = vrot.slane %v961_v7, %v329_v53  ;;  %v356_v0 = vrot.slane %v1017_v55, %v964_v8  ;;  %v360_v1 = vrot.slane %v1019_v56, %v964_v8  ;;  %s831_s28 = smov [#allocation5]  }
  0x43   : > { %v366_v2 = vrot.slane %v1017_v55, %v967_v9  ;;  %v378_v8 = vrot.slane %v1017_v55, %v954_v4  ;;  %p713_p11 = pnand %p712_p8, %p1180_p10  ;;  %s715_s30 = sshll.u32 %s831_s28, 4  ;;  %s716_s30 = int_to_ptr.vmem [resolvable:$false] %s715_s30 }
  0x44   : > { %s717_s4 = scalar_lea.vmem %s716_s30, 512  ;;  %p718_p1 = scmp.lt.s32.totalorder %s1073_s8, %s716_s30 }
  0x45   : > { %p714_p13 = pneg %p713_p11  ;;  %p719_p3 = scmp.lt.s32.totalorder %s717_s4, %s711_s23 }
  0x47   : > { %p720_p5 = por %p719_p3, %p718_p1 }
  0x49   : > { %p721_p6 = pnand %p720_p5, %p714_p13 }
  0xbf   : > { %v981_v14 = vpop.permute.xlu0 %226 }
  0xc0   : > { %v237_v19 = vsub.f32 %v981_v14, %v232_v10  ;;  %v238_v20 = vsub.f32 %v981_v14, %v236_v11  ;;  %v247_v21 = vsub.f32 %v981_v14, %v975_v12  ;;  %v248_v22 = vsub.f32 %v981_v14, %v979_v13 }
  0xc1   : > { %v344_v11 = vrot.slane %v959_v6, %v343_v54  ;;  %vm401_vm0 = vcmp.le.f32.partialorder %v981_v14, %v975_v12  ;;  %vm402_vm1 = vcmp.le.f32.partialorder %v981_v14, %v979_v13 }
  0xc2   : > { %v997_v23 = vmax.f32 %v237_v19, 0.0  ;;  %v999_v24 = vmax.f32 %v238_v20, 0.0  ;;  %v1001_v25 = vmax.f32 %v247_v21, 0.0  ;;  %v1003_v26 = vmax.f32 %v248_v22, 0.0 }
  0xc3   : > { %v382_v19 = vrot.slane %v1019_v56, %v954_v4  ;;  %v392_v20 = vrot.slane %v1017_v55, %v957_v5 }
  0xc4   : > { %v261_v27 = vmul.f32 %v256_v15, %v997_v23  ;;  %v262_v28 = vmul.f32 %v260_v16, %v999_v24  ;;  %v277_v29 = vmul.f32 %v272_v17, %v997_v23  ;;  %v278_v30 = vmul.f32 %v276_v18, %v999_v24 }
  0xc5   : > { %v285_v31 = vmul.f32 %v256_v15, %v1001_v25  ;;  %v286_v32 = vmul.f32 %v260_v16, %v1003_v26  ;;  %v293_v33 = vmul.f32 %v272_v17, %v1001_v25  ;;  %v294_v34 = vmul.f32 %v276_v18, %v1003_v26 }
  0xc6   : > { %v263_v35 = vsub.f32 0.0, %v261_v27  ;;  %v264_v36 = vsub.f32 0.0, %v262_v28  ;;  %v279_v37 = vsub.f32 0.0, %v277_v29  ;;  %v280_v38 = vsub.f32 0.0, %v278_v30 }
  0xc7   : > { %v287_v39 = vsub.f32 0.0, %v285_v31  ;;  %v288_v40 = vsub.f32 0.0, %v286_v32  ;;  %v295_v41 = vsub.f32 0.0, %v293_v33  ;;  %v296_v46 = vsub.f32 0.0, %v294_v34 }
  0xc8   : > { %v265_v42 = vmul.f32 1.442695, %v263_v35  ;;  %v267_v43 = vmul.f32 1.442695, %v264_v36  ;;  %v281_v44 = vmul.f32 1.442695, %v279_v37  ;;  %v348_v15 = vrot.slane %v961_v7, %v343_v54 }
  0xc9   : > { %v283_v45 = vmul.f32 1.442695, %v280_v38  ;;  %v289_v47 = vmul.f32 1.442695, %v287_v39  ;;  %v291_v48 = vmul.f32 1.442695, %v288_v40  ;;  %v370_v16 = vrot.slane %v1019_v56, %v967_v9 }
  0xca   : > { %667 = vpow2.f32 %v265_v42  ;;  %v297_v49 = vmul.f32 1.442695, %v295_v41  ;;  %v299_v50 = vmul.f32 1.442695, %v296_v46  ;;  %v396_v9 = vrot.slane %v1019_v56, %v957_v5 }
  0xcb   : > { %669 = vpow2.f32 %v267_v43 }
  0xcc   : > { %671 = vpow2.f32 %v281_v44 }
  0xcd   : > { %673 = vpow2.f32 %v283_v45 }
  0xce   : > { %675 = vpow2.f32 %v289_v47 }
  0xcf   : > { %677 = vpow2.f32 %v291_v48 }
  0xd0   : > { %679 = vpow2.f32 %v297_v49 }
  0xd1   : > { %681 = vpow2.f32 %v299_v50 }
  0xd4   : > { %v668_v62 = vpop.eup %667 }
  0xd5   : > { %v670_v3 = vpop.eup %669  ;;  %v301_v10 = vsub.f32 1.0, %v668_v62 }
  0xd6   : > { %v672_v17 = vpop.eup %671  ;;  %v302_v18 = vsub.f32 1.0, %v670_v3 }
  0xd7   : > { %v674_v6 = vpop.eup %673  ;;  %v313_v21 = vsub.f32 1.0, %v672_v17  ;;  %v325_v7 = vsub.f32 %v672_v17, %v668_v62  ;;  %v339_v22 = vmul.f32 %v672_v17, %v997_v23  ;;  %v311_v30 = vmul.f32 %v306_v57, %v301_v10 }
  0xd8   : > { %v676_v27 = vpop.eup %675  ;;  %v314_v28 = vsub.f32 1.0, %v674_v6  ;;  %v326_v29 = vsub.f32 %v674_v6, %v670_v3  ;;  %v340_v23 = vmul.f32 %v674_v6, %v999_v24  ;;  %v312_v5 = vmul.f32 %v310_v58, %v302_v18 }
  0xd9   : > { %v678_v4 = vpop.eup %677  ;;  %v323_v31 = vmul.f32 %v318_v59, %v313_v21  ;;  %v335_v32 = vmul.f32 %v330_v61, %v325_v7  ;;  %v349_v36 = vmul.f32 %v344_v11, %v339_v22  ;;  %v361_v39 = vmul.f32 %v676_v27, %v356_v0 }
  0xda   : > { %v680_v33 = vpop.eup %679  ;;  %v324_v34 = vmul.f32 %v322_v60, %v314_v28  ;;  %v336_v35 = vmul.f32 %v334_v63, %v326_v29  ;;  %v362_v43 = vmul.f32 %v678_v4, %v360_v1  ;;  %v350_v24 = vmul.f32 %v348_v15, %v340_v23 }
  0xdb   : > { %v682_v37 = vpop.eup %681  ;;  %v337_v38 = vadd.f32 %v335_v32, %v323_v31  ;;  %v373_v40 = vsub.f32 %v680_v33, %v676_v27  ;;  %v387_v41 = vmul.f32 %v680_v33, %v1001_v25  ;;  %v371_v46 = vmul.f32 %v680_v33, %v366_v2 }
  0xdc   : > { %v338_v42 = vadd.f32 %v336_v35, %v324_v34  ;;  %v374_v44 = vsub.f32 %v682_v37, %v678_v4  ;;  %v388_v45 = vmul.f32 %v682_v37, %v1003_v26  ;;  %v403_v48 = vsel %vm401_vm0, %v311_v30, %v361_v39 }
  0xdd   : > { %v383_v47 = vmul.f32 %v378_v8, %v373_v40  ;;  %v351_v49 = vadd.f32 %v349_v36, %v337_v38  ;;  %v372_v25 = vmul.f32 %v682_v37, %v370_v16  ;;  %v404_v26 = vsel %vm402_vm1, %v312_v5, %v362_v43 }
  0xde   : > { %v384_v50 = vmul.f32 %v382_v19, %v374_v44  ;;  %v397_v52 = vmul.f32 %v392_v20, %v387_v41  ;;  %v407_v53 = vmax.f32 %v403_v48, 0.0  ;;  %v408_v54 = vmax.f32 %v404_v26, 0.0 }
  0xdf   : > { %v385_v51 = vadd.f32 %v383_v47, %v371_v46  ;;  %v352_v55 = vadd.f32 %v350_v24, %v338_v42  ;;  %v398_v57 = vmul.f32 %v396_v9, %v388_v45 }
  0xe0   : > { %v386_v56 = vadd.f32 %v384_v50, %v372_v25  ;;  %409 = vst [vmem:[%s204_s7] sm:$0xff] %v407_v53  ;;  %410 = vst [vmem:[%s204_s7 + $0x8] sm:$0xff] %v408_v54 }
  0xe1   : > { %v399_v58 = vadd.f32 %v397_v52, %v385_v51 }
  0xe2   : > { %v400_v59 = vadd.f32 %v398_v57, %v386_v56 }
  0xe3   : > { %724 = shalt.err (!%p721_p6)
}
  0xe4   : > { %s725_s5 = scalar_lea.hbm %s1071_s11, 256  ;;  %s729_s7 = scalar_lea.hbm %s1167_s2, 512 }
  0xe5   : > { %p726_p7 = scmp.ne.s32.totalorder %s1071_s11, %s725_s5  ;;  %p730_p0 = scmp.lt.u32.totalorder %s1071_s11, %s1167_s2 }
  0xe6   : > { %p731_p2 = scmp.lt.u32.totalorder %s729_s7, %s725_s5  ;;  %p733_p8 = scmp.lt.u32.totalorder %s725_s5, %s1071_s11 }
  0xe7   : > { %p727_p9 = pnand %p726_p7, %p1180_p10 }
  0xe8   : > { %p732_p4 = por %p731_p2, %p730_p0 }
  0xe9   : > { %p728_p12 = pneg %p727_p9 }
  0xea   : > { %p734_p11 = por %p733_p8, %p732_p4 }
  0xec   : > { %p735_p13 = pnand %p734_p11, %p728_p12 }
  0xee   : > { %738 = shalt.err (!%p735_p13)
}
  0xef   : > { %596 = dma.vmem_to_hbm [thread:$0]  (%p1180_p10), %s1073_s8, 256, %s1071_s11, %s416_s21   ;;  %v405_v60 = vsel %vm401_vm0, %v351_v49, %v399_v58  ;;  %v406_v61 = vsel %vm402_vm1, %v352_v55, %v400_v59 }
  0xf0   : > { %v411_v62 = vmax.f32 %v405_v60, 0.0  ;;  %v412_v63 = vmax.f32 %v406_v61, 0.0  ;;  %s1113_s30 = scalar_lea.hbm %s1168_s3, %s590_s6  ;;  %s421_s8 = scalar_lea.sflag [#allocation7], %s1038_s26 }
  0xf1   : > { %s739_s11 = scalar_lea.vmem %s1117_s19, 256  ;;  %s832_s15 = smov [#allocation6]  }
  0xf2   : > { %413 = vst [vmem:[%s1077_s18] sm:$0xff] %v411_v62  ;;  %414 = vst [vmem:[%s1077_s18 + $0x8] sm:$0xff] %v412_v63  ;;  %p740_p1 = scmp.ne.s32.totalorder %s1117_s19, %s739_s11  ;;  %s743_s21 = sshll.u32 %s832_s15, 4  ;;  %s744_s21 = int_to_ptr.vmem [resolvable:$false] %s743_s21 }
  0xf3   : > { %s745_s4 = scalar_lea.vmem %s744_s21, 512  ;;  %p746_p6 = scmp.lt.s32.totalorder %s1117_s19, %s744_s21 }
  0xf4   : > { %p741_p3 = pnand %p740_p1, %p1180_p10  ;;  %p747_p7 = scmp.lt.s32.totalorder %s745_s4, %s739_s11 }
  0xf6   : > { %p742_p5 = pneg %p741_p3  ;;  %p748_p9 = por %p747_p7, %p746_p6 }
  0xf8   : > { %p749_p12 = pnand %p748_p9, %p742_p5 }
  0xfa   : > { %752 = shalt.err (!%p749_p12)
}
  0xfb   : > { %s753_s26 = scalar_lea.hbm %s1113_s30, 256  ;;  %s757_s5 = scalar_lea.hbm %s1168_s3, 512 }
  0xfc   : > { %p754_p0 = scmp.ne.s32.totalorder %s1113_s30, %s753_s26  ;;  %p758_p8 = scmp.lt.u32.totalorder %s1113_s30, %s1168_s3 }
  0xfd   : > { %p759_p11 = scmp.lt.u32.totalorder %s757_s5, %s753_s26  ;;  %p761_p1 = scmp.lt.u32.totalorder %s753_s26, %s1113_s30 }
  0xfe   : > { %p755_p2 = pnand %p754_p0, %p1180_p10 }
  0xff   : > { %p760_p13 = por %p759_p11, %p758_p8 }
 0x100   : > { %p756_p4 = pneg %p755_p2 }
 0x101   : > { %p762_p3 = por %p761_p1, %p760_p13 }
 0x103   : > { %p763_p5 = pnand %p762_p3, %p756_p4 }
 0x105   : > { %766 = shalt.err (!%p763_p5)
}
 0x106   : > { %597 = dma.vmem_to_hbm [thread:$0]  (%p1180_p10), %s1117_s19, 256, %s1113_s30, %s421_s8  }
 0x107 PF: > { %p613_p6 = scmp.ge.s32.totalorder %s825_s17, 2  ;;  %s465_s7 = sand.u32 1, %s805_s12  }
 0x108   : > { %p1181_p7 = scmp.ne.s32.totalorder %s1174_s24, 0  ;;  %s466_s9 = scalar_lea.sflag [#allocation4], %s465_s7 }
 0x10a   : > { %p605_p9 = pnand %p613_p6, %p1181_p7 }
 0x10c   : > { %796 = dma.done.wait (!%p605_p9), %s466_s9, 256  }
 0x10d   : > { %798 = vsyncadd (!%p605_p9), %s466_s9, 4294967040  ;;  %s475_s10 = scalar_lea.sflag [#allocation7], %s465_s7 }
 0x10e   : > { %800 = dma.done.wait (!%p605_p9), %s475_s10, 256  }
 0x10f   : > { %802 = vsyncadd (!%p605_p9), %s475_s10, 4294967040  ;;  %s21_s17 = sadd.s32 1, %s825_s17   ;;  %s1182_s12 = smov %s809_s13 }
 0x110   : > { %p18_p12 = scmp.ge.s32.totalorder %s21_s17, 4   ;;  %s1183_s13 = smov %s813_s14 }
 0x111   : > { %s1184_s14 = smov %s906_s25  ;;  %s1185_s15 = smov %s821_s16 }
 0x112   : > { %s1186_s16 = smov %s1188_s20  ;;  %20 = sbr.rel (!%p18_p12) target bundleno = 7 (0x7), region = 86 }
 0x119   :  { %480 = vsyncpa [#allocation3], 1 }
 0x11a   :  { %482 = vsyncpa [#allocation3 + $0x1], 1 }
 0x11b   :  { %483 = vsyncpa [#allocation4], 1 }
 0x11c   :  { %485 = vsyncpa [#allocation4 + $0x1], 1 }
 0x11d   :  { %486 = vsyncpa [#allocation7], 1 }
 0x11e   :  { %488 = vsyncpa [#allocation7 + $0x1], 1 }

</bundles_post_ra>
